<compile_context>
chip_gen: v6e
topology: v6e:2x2x1
jax: 0.10.0
libtpu: 0.0.40
codegen_flags: <defaults>
</compile_context>

<pallas_src>
import functools

import jax
import jax.numpy as jnp
from jax.experimental import pallas as pl
from jax.experimental.pallas import tpu as pltpu

_LANE = 128      # lane width (last dim granule)
_SUBLANE = 8     # sublane granule (second-to-last dim)


def _round_up(n, m):
    return ((n + m - 1) // m) * m


def _sigmoid(z):
    # z is f32. exp -> EUP slot; approx reciprocal -> EUP slot (keeps VALU free).
    return pl.reciprocal(1.0 + jnp.exp(-z), approx=True)


def sae_kernel(x_ref,
               w1_ref, b1_ref,
               w2_ref, b2_ref,
               w3_ref, b3_ref,
               w4_ref, b4_ref,
               o_ref):
    """Whole 4-layer MLP fused into one kernel; one (tb, P) batch tile per grid step.

    x / weights arrive as bf16 (halved HBM traffic), matmuls accumulate in f32,
    bias-add + sigmoid run in f32 (no bf16 elementwise -> v5e friendly).
    """
    x = x_ref[...]                                                    # (tb, P) bf16
    z1 = jnp.dot(x, w1_ref[...], preferred_element_type=jnp.float32) + b1_ref[...]
    h1 = _sigmoid(z1)                                                 # f32
    z2 = jnp.dot(h1.astype(w2_ref.dtype), w2_ref[...],
                 preferred_element_type=jnp.float32) + b2_ref[...]
    h2 = _sigmoid(z2)
    z3 = jnp.dot(h2.astype(w3_ref.dtype), w3_ref[...],
                 preferred_element_type=jnp.float32) + b3_ref[...]
    h3 = _sigmoid(z3)
    out = jnp.dot(h3.astype(w4_ref.dtype), w4_ref[...],
                  preferred_element_type=jnp.float32) + b4_ref[...]
    o_ref[...] = out.astype(o_ref.dtype)


def prepare_params(params, compute_dtype=jnp.bfloat16):
    """One-time parameter prep (hoisted out of the per-call path).

    PyTorch layout (out, in) weights -> (in, out); nb_movies axis zero-padded to a
    multiple of 128; weights cast to bf16 (MXU operands); biases kept f32 (1, out).
    Zero padding keeps the math exact: padded x columns are 0, padded w1 rows are 0,
    padded w4 columns / b4 lanes are 0 and get sliced off after the kernel.
    """
    nb_movies = params["w1"].shape[1]
    P = _round_up(nb_movies, _LANE)
    pad_f = P - nb_movies

    w1 = jnp.pad(params["w1"].T, ((0, pad_f), (0, 0))).astype(compute_dtype)   # (P, 20)
    w2 = params["w2"].T.astype(compute_dtype)                                  # (20, 10)
    w3 = params["w3"].T.astype(compute_dtype)                                  # (10, 20)
    w4 = jnp.pad(params["w4"].T, ((0, 0), (0, pad_f))).astype(compute_dtype)   # (20, P)

    b1 = params["b1"].reshape(1, -1).astype(jnp.float32)
    b2 = params["b2"].reshape(1, -1).astype(jnp.float32)
    b3 = params["b3"].reshape(1, -1).astype(jnp.float32)
    b4 = jnp.pad(params["b4"].reshape(1, -1), ((0, 0), (0, pad_f))).astype(jnp.float32)

    return dict(w1=w1, b1=b1, w2=w2, b2=b2, w3=w3, b3=b3, w4=w4, b4=b4)


@functools.partial(jax.jit, static_argnames=("tb",))
def stacked_autoencoder_forward(x, prep, *, tb=512):
    """x: (B, nb_movies) float32; prep: output of prepare_params. Returns (B, nb_movies) f32."""
    B, nb_movies = x.shape
    P = prep["w1"].shape[0]                       # padded feature dim (multiple of 128)
    assert prep["w4"].shape[1] == P

    # Batch tile: big by default (amortizes the ~0.35us/step overhead and feeds the
    # MXU full rows), but clamped for small batches so we don't pad B to 512.
    tb_eff = max(_SUBLANE, min(tb, _round_up(B, _SUBLANE)))
    B_pad = _round_up(B, tb_eff)
    grid = (B_pad // tb_eff,)

    # Pad batch + feature axes with zeros; cast the DMA'd activations to bf16.
    xp = jnp.pad(x, ((0, B_pad - B), (0, P - nb_movies))).astype(jnp.bfloat16)

    def const2d(arr):
        # Weights / biases: single full-array block, same block every grid step.
        return pl.BlockSpec(arr.shape, lambda i: (0, 0))

    # Explicit VMEM budget: double-buffered x (bf16) + out (f32) tiles dominate;
    # weights/biases (default double-buffered) are tiny. 2x headroom, capped at
    # 64 MiB so it stays valid on v7x.
    io_bytes = 2 * tb_eff * P * 2 + 2 * tb_eff * P * 4
    w_bytes = 2 * sum(int(prep[k].size) * prep[k].dtype.itemsize
                      for k in ("w1", "b1", "w2", "b2", "w3", "b3", "w4", "b4"))
    vmem_limit = int(min(64 * 1024 * 1024,
                         max(32 * 1024 * 1024, 2 * (io_bytes + w_bytes))))

    out = pl.pallas_call(
        sae_kernel,
        out_shape=jax.ShapeDtypeStruct((B_pad, P), jnp.float32),
        grid_spec=pltpu.PrefetchScalarGridSpec(
            num_scalar_prefetch=0,
            grid=grid,
            in_specs=[
                pl.BlockSpec((tb_eff, P), lambda i: (i, 0)),   # x batch tile
                const2d(prep["w1"]), const2d(prep["b1"]),
                const2d(prep["w2"]), const2d(prep["b2"]),
                const2d(prep["w3"]), const2d(prep["b3"]),
                const2d(prep["w4"]), const2d(prep["b4"]),
            ],
            out_specs=pl.BlockSpec((tb_eff, P), lambda i: (i, 0)),
        ),
        compiler_params=pltpu.CompilerParams(
            dimension_semantics=("parallel",),       # batch axis shards across TCs (v7x)
            vmem_limit_bytes=vmem_limit,
        ),
    )(xp, prep["w1"], prep["b1"], prep["w2"], prep["b2"],
      prep["w3"], prep["b3"], prep["w4"], prep["b4"])

    return out[:B, :nb_movies]


def init_params(key, nb_movies):
    """Deterministic init, PyTorch nn.Linear layout: W is (out, in), b is (out,)."""
    dims = [(20, nb_movies), (10, 20), (20, 10), (nb_movies, 20)]
    params = {}
    for idx, (out_f, in_f) in enumerate(dims, start=1):
        key, kw, kb = jax.random.split(key, 3)
        bound = 1.0 / jnp.sqrt(in_f)  # PyTorch default U(-1/sqrt(in), 1/sqrt(in))
        params[f"w{idx}"] = jax.random.uniform(
            kw, (out_f, in_f), jnp.float32, minval=-bound, maxval=bound)
        params[f"b{idx}"] = jax.random.uniform(
            kb, (out_f,), jnp.float32, minval=-bound, maxval=bound)
    return params


def reference_forward(x, params):
    """Pure-JAX reference mirroring the PyTorch module, with the kernel's precision
    choices (bf16 matmul operands, f32 accumulate, f32 elementwise)."""
    def lin(h, w, b):
        return jnp.dot(h.astype(jnp.bfloat16), w.T.astype(jnp.bfloat16),
                       preferred_element_type=jnp.float32) + b
    h = jax.nn.sigmoid(lin(x, params["w1"], params["b1"]))
    h = jax.nn.sigmoid(lin(h, params["w2"], params["b2"]))
    h = jax.nn.sigmoid(lin(h, params["w3"], params["b3"]))
    return lin(h, params["w4"], params["b4"])


if __name__ == "__main__":
    nb_movies = 200   # synthetic stand-in for int(max(movie ids)); not a 128-multiple on purpose
    batch = 16

    key = jax.random.PRNGKey(0)
    key, kx = jax.random.split(key)
    # Ratings-like input: values in [0, 5]
    x = jax.random.uniform(kx, (batch, nb_movies), jnp.float32, minval=0.0, maxval=5.0)

    params = init_params(key, nb_movies)
    prep = prepare_params(params)          # one-time transpose/pad/cast (hoisted out of the call)

    out = stacked_autoencoder_forward(x, prep)      # tb auto-clamped to the small demo batch
    out = jax.block_until_ready(out)

    ref = reference_forward(x, params)
    assert out.shape == (batch, nb_movies)
    max_err = float(jnp.max(jnp.abs(out - ref)))
    # Tolerance loosened for bf16 matmul operands + approx-reciprocal sigmoid.
    assert jnp.allclose(out, ref, atol=2e-2, rtol=2e-2), f"mismatch vs reference (max abs err {max_err})"

    print("KERNEL_OK")
</pallas_src>

<mosaic_0001>
module attributes {stable_mosaic.version = 11 : i64} {
  func.func @sae_kernel(%arg0: i32, %arg1: memref<16x256xbf16, #tpu.memory_space<vmem>>, %arg2: memref<256x20xbf16, #tpu.memory_space<vmem>>, %arg3: memref<1x20xf32, #tpu.memory_space<vmem>>, %arg4: memref<20x10xbf16, #tpu.memory_space<vmem>>, %arg5: memref<1x10xf32, #tpu.memory_space<vmem>>, %arg6: memref<10x20xbf16, #tpu.memory_space<vmem>>, %arg7: memref<1x20xf32, #tpu.memory_space<vmem>>, %arg8: memref<20x256xbf16, #tpu.memory_space<vmem>>, %arg9: memref<1x256xf32, #tpu.memory_space<vmem>>, %arg10: memref<16x256xf32, #tpu.memory_space<vmem>>) attributes {dimension_semantics = [#tpu.dimension_semantics<parallel>], iteration_bounds = array<i64: 1>, scalar_prefetch = 0 : i64, scratch_operands = 0 : i64, tpu.core_type = #tpu.core_type<tc>, window_params = [{transform_indices = @transform_0, window_bounds = array<i64: 16, 256>}, {pipeline_mode = #tpu.pipeline_mode<synchronous>, transform_indices = @transform_1, window_bounds = array<i64: 256, 20>}, {pipeline_mode = #tpu.pipeline_mode<synchronous>, transform_indices = @transform_2, window_bounds = array<i64: 1, 20>}, {pipeline_mode = #tpu.pipeline_mode<synchronous>, transform_indices = @transform_3, window_bounds = array<i64: 20, 10>}, {pipeline_mode = #tpu.pipeline_mode<synchronous>, transform_indices = @transform_4, window_bounds = array<i64: 1, 10>}, {pipeline_mode = #tpu.pipeline_mode<synchronous>, transform_indices = @transform_5, window_bounds = array<i64: 10, 20>}, {pipeline_mode = #tpu.pipeline_mode<synchronous>, transform_indices = @transform_6, window_bounds = array<i64: 1, 20>}, {pipeline_mode = #tpu.pipeline_mode<synchronous>, transform_indices = @transform_7, window_bounds = array<i64: 20, 256>}, {pipeline_mode = #tpu.pipeline_mode<synchronous>, transform_indices = @transform_8, window_bounds = array<i64: 1, 256>}, {transform_indices = @transform_9, window_bounds = array<i64: 16, 256>}]} {
    %c0 = arith.constant 0 : index
    %c0_0 = arith.constant 0 : index
    %0 = vector.load %arg1[%c0, %c0_0] : memref<16x256xbf16, #tpu.memory_space<vmem>>, vector<16x256xbf16>
    %c0_1 = arith.constant 0 : index
    %c0_2 = arith.constant 0 : index
    %1 = vector.load %arg2[%c0_1, %c0_2] : memref<256x20xbf16, #tpu.memory_space<vmem>>, vector<256x20xbf16>
    %cst = arith.constant dense<0.000000e+00> : vector<16x20xf32>
    %2 = tpu.matmul %0, %1, %cst {dimension_numbers = #tpu.dot_dimension_numbers<[1], [0], [0], [1], [0, 0, 1, 1], [], []>} : vector<16x256xbf16>, vector<256x20xbf16>, vector<16x20xf32> -> vector<16x20xf32>
    %c0_3 = arith.constant 0 : index
    %c0_4 = arith.constant 0 : index
    %3 = vector.load %arg3[%c0_3, %c0_4] : memref<1x20xf32, #tpu.memory_space<vmem>>, vector<1x20xf32>
    %4 = vector.broadcast %3 : vector<1x20xf32> to vector<16x20xf32>
    %5 = arith.addf %2, %4 : vector<16x20xf32>
    %cst_5 = arith.constant 0.000000e+00 : f32
    %6 = vector.broadcast %cst_5 : f32 to vector<16x20xf32>
    %7 = arith.subf %6, %5 : vector<16x20xf32>
    %8 = math.exp %7 : vector<16x20xf32>
    %cst_6 = arith.constant 1.000000e+00 : f32
    %9 = vector.broadcast %cst_6 : f32 to vector<16x20xf32>
    %10 = arith.addf %9, %8 : vector<16x20xf32>
    %11 = tpu.reciprocal %10 {approx = true} : vector<16x20xf32> -> vector<16x20xf32>
    %12 = arith.truncf %11 : vector<16x20xf32> to vector<16x20xbf16>
    %c0_7 = arith.constant 0 : index
    %c0_8 = arith.constant 0 : index
    %13 = vector.load %arg4[%c0_7, %c0_8] : memref<20x10xbf16, #tpu.memory_space<vmem>>, vector<20x10xbf16>
    %cst_9 = arith.constant dense<0.000000e+00> : vector<16x10xf32>
    %14 = tpu.matmul %12, %13, %cst_9 {dimension_numbers = #tpu.dot_dimension_numbers<[1], [0], [0], [1], [0, 0, 1, 1], [], []>} : vector<16x20xbf16>, vector<20x10xbf16>, vector<16x10xf32> -> vector<16x10xf32>
    %c0_10 = arith.constant 0 : index
    %c0_11 = arith.constant 0 : index
    %15 = vector.load %arg5[%c0_10, %c0_11] : memref<1x10xf32, #tpu.memory_space<vmem>>, vector<1x10xf32>
    %16 = vector.broadcast %15 : vector<1x10xf32> to vector<16x10xf32>
    %17 = arith.addf %14, %16 : vector<16x10xf32>
    %cst_12 = arith.constant 0.000000e+00 : f32
    %18 = vector.broadcast %cst_12 : f32 to vector<16x10xf32>
    %19 = arith.subf %18, %17 : vector<16x10xf32>
    %20 = math.exp %19 : vector<16x10xf32>
    %cst_13 = arith.constant 1.000000e+00 : f32
    %21 = vector.broadcast %cst_13 : f32 to vector<16x10xf32>
    %22 = arith.addf %21, %20 : vector<16x10xf32>
    %23 = tpu.reciprocal %22 {approx = true} : vector<16x10xf32> -> vector<16x10xf32>
    %24 = arith.truncf %23 : vector<16x10xf32> to vector<16x10xbf16>
    %c0_14 = arith.constant 0 : index
    %c0_15 = arith.constant 0 : index
    %25 = vector.load %arg6[%c0_14, %c0_15] : memref<10x20xbf16, #tpu.memory_space<vmem>>, vector<10x20xbf16>
    %cst_16 = arith.constant dense<0.000000e+00> : vector<16x20xf32>
    %26 = tpu.matmul %24, %25, %cst_16 {dimension_numbers = #tpu.dot_dimension_numbers<[1], [0], [0], [1], [0, 0, 1, 1], [], []>} : vector<16x10xbf16>, vector<10x20xbf16>, vector<16x20xf32> -> vector<16x20xf32>
    %c0_17 = arith.constant 0 : index
    %c0_18 = arith.constant 0 : index
    %27 = vector.load %arg7[%c0_17, %c0_18] : memref<1x20xf32, #tpu.memory_space<vmem>>, vector<1x20xf32>
    %28 = vector.broadcast %27 : vector<1x20xf32> to vector<16x20xf32>
    %29 = arith.addf %26, %28 : vector<16x20xf32>
    %cst_19 = arith.constant 0.000000e+00 : f32
    %30 = vector.broadcast %cst_19 : f32 to vector<16x20xf32>
    %31 = arith.subf %30, %29 : vector<16x20xf32>
    %32 = math.exp %31 : vector<16x20xf32>
    %cst_20 = arith.constant 1.000000e+00 : f32
    %33 = vector.broadcast %cst_20 : f32 to vector<16x20xf32>
    %34 = arith.addf %33, %32 : vector<16x20xf32>
    %35 = tpu.reciprocal %34 {approx = true} : vector<16x20xf32> -> vector<16x20xf32>
    %36 = arith.truncf %35 : vector<16x20xf32> to vector<16x20xbf16>
    %c0_21 = arith.constant 0 : index
    %c0_22 = arith.constant 0 : index
    %37 = vector.load %arg8[%c0_21, %c0_22] : memref<20x256xbf16, #tpu.memory_space<vmem>>, vector<20x256xbf16>
    %cst_23 = arith.constant dense<0.000000e+00> : vector<16x256xf32>
    %38 = tpu.matmul %36, %37, %cst_23 {dimension_numbers = #tpu.dot_dimension_numbers<[1], [0], [0], [1], [0, 0, 1, 1], [], []>} : vector<16x20xbf16>, vector<20x256xbf16>, vector<16x256xf32> -> vector<16x256xf32>
    %c0_24 = arith.constant 0 : index
    %c0_25 = arith.constant 0 : index
    %39 = vector.load %arg9[%c0_24, %c0_25] : memref<1x256xf32, #tpu.memory_space<vmem>>, vector<1x256xf32>
    %40 = vector.broadcast %39 : vector<1x256xf32> to vector<16x256xf32>
    %41 = arith.addf %38, %40 : vector<16x256xf32>
    %c0_26 = arith.constant 0 : index
    %c0_27 = arith.constant 0 : index
    %42 = vector.load %arg10[%c0_26, %c0_27] : memref<16x256xf32, #tpu.memory_space<vmem>>, vector<16x256xf32>
    tpu.vector_store %arg10[%c0_26, %c0_27], %41 {strides = array<i32>} : memref<16x256xf32, #tpu.memory_space<vmem>>, vector<16x256xf32>,
    return
  }
  func.func @transform_0(%arg0: i32) -> (i32, i32) {
    %c0_i32 = arith.constant 0 : i32
    %c0_i32_0 = arith.constant 0 : i32
    return %arg0, %c0_i32 : i32, i32
  }
  func.func @transform_1(%arg0: i32) -> (i32, i32) {
    %c0_i32 = arith.constant 0 : i32
    %c0_i32_0 = arith.constant 0 : i32
    %c0_i32_1 = arith.constant 0 : i32
    return %c0_i32, %c0_i32_0 : i32, i32
  }
  func.func @transform_2(%arg0: i32) -> (i32, i32) {
    %c0_i32 = arith.constant 0 : i32
    %c0_i32_0 = arith.constant 0 : i32
    %c0_i32_1 = arith.constant 0 : i32
    return %c0_i32, %c0_i32_0 : i32, i32
  }
  func.func @transform_3(%arg0: i32) -> (i32, i32) {
    %c0_i32 = arith.constant 0 : i32
    %c0_i32_0 = arith.constant 0 : i32
    %c0_i32_1 = arith.constant 0 : i32
    return %c0_i32, %c0_i32_0 : i32, i32
  }
  func.func @transform_4(%arg0: i32) -> (i32, i32) {
    %c0_i32 = arith.constant 0 : i32
    %c0_i32_0 = arith.constant 0 : i32
    %c0_i32_1 = arith.constant 0 : i32
    return %c0_i32, %c0_i32_0 : i32, i32
  }
  func.func @transform_5(%arg0: i32) -> (i32, i32) {
    %c0_i32 = arith.constant 0 : i32
    %c0_i32_0 = arith.constant 0 : i32
    %c0_i32_1 = arith.constant 0 : i32
    return %c0_i32, %c0_i32_0 : i32, i32
  }
  func.func @transform_6(%arg0: i32) -> (i32, i32) {
    %c0_i32 = arith.constant 0 : i32
    %c0_i32_0 = arith.constant 0 : i32
    %c0_i32_1 = arith.constant 0 : i32
    return %c0_i32, %c0_i32_0 : i32, i32
  }
  func.func @transform_7(%arg0: i32) -> (i32, i32) {
    %c0_i32 = arith.constant 0 : i32
    %c0_i32_0 = arith.constant 0 : i32
    %c0_i32_1 = arith.constant 0 : i32
    return %c0_i32, %c0_i32_0 : i32, i32
  }
  func.func @transform_8(%arg0: i32) -> (i32, i32) {
    %c0_i32 = arith.constant 0 : i32
    %c0_i32_0 = arith.constant 0 : i32
    %c0_i32_1 = arith.constant 0 : i32
    return %c0_i32, %c0_i32_0 : i32, i32
  }
  func.func @transform_9(%arg0: i32) -> (i32, i32) {
    %c0_i32 = arith.constant 0 : i32
    %c0_i32_0 = arith.constant 0 : i32
    return %arg0, %c0_i32 : i32, i32
  }
}

</mosaic_0001>

<bundles_post_ra>
// kernel: stacked_autoencoder_forward.1
= control target key start
LH: loop header
LB: loop body
LE: loop exit
PB: predicated region body
PF: predicated region fallthrough
CT: control target
= control target key end

     0   :  { %s790_s0 = inlined_call_operand.vmem [shape: bf16[16,256], index: 0, kind: input, shape index: {}]   ;;  %s791_s1 = inlined_call_operand.vmem [shape: bf16[256,20], index: 1, kind: input, shape index: {}]   ;;  %s792_s2 = inlined_call_operand.vmem [shape: f32[1,20], index: 2, kind: input, shape index: {}]   ;;  %s793_s3 = inlined_call_operand.vmem [shape: bf16[20,10], index: 3, kind: input, shape index: {}]   ;;  %s794_s4 = inlined_call_operand.vmem [shape: f32[1,10], index: 4, kind: input, shape index: {}]   ;;  %s795_s5 = inlined_call_operand.vmem [shape: bf16[10,20], index: 5, kind: input, shape index: {}]   ;;  %s796_s6 = inlined_call_operand.vmem [shape: f32[1,20], index: 6, kind: input, shape index: {}]   ;;  %s797_s7 = inlined_call_operand.vmem [shape: bf16[20,256], index: 7, kind: input, shape index: {}]   ;;  %s798_s8 = inlined_call_operand.vmem [shape: f32[1,256], index: 8, kind: input, shape index: {}]   ;;  %s799_s9 = inlined_call_operand.hbm [shape: f32[16,256], index: 9, kind: output, shape index: {}]  }
   0x1   :  { %v567_v0 = vld [vmem:[%s791_s1 + $0x78] sm:$0xff]   ;;  %v569_v2 = vld [vmem:[%s791_s1 + $0x70] sm:$0xff]   ;;  %v571_v4 = vld [vmem:[%s791_s1 + $0x68] sm:$0xff]  }
   0x2   :  { %v568_v1 = vld [vmem:[%s791_s1 + $0x38] sm:$0xff]   ;;  %520 = vmatprep.subr.bf16.mxu0 %v567_v0  ;;  %v570_v3 = vld [vmem:[%s791_s1 + $0x30] sm:$0xff]   ;;  %v572_v5 = vld [vmem:[%s791_s1 + $0x28] sm:$0xff]  }
   0x3   :  { %521 = vmatpush3.bf16.msra.mxu0 %v568_v1  ;;  %v573_v6 = vld [vmem:[%s791_s1 + $0x60] sm:$0xff]   ;;  %v575_v8 = vld [vmem:[%s791_s1 + $0x58] sm:$0xff]   ;;  %v577_v10 = vld [vmem:[%s791_s1 + $0x50] sm:$0xff]  }
   0x4   :  { %522 = vmatprep.subr.bf16.mxu0 %v569_v2  ;;  %v574_v7 = vld [vmem:[%s791_s1 + $0x20] sm:$0xff]   ;;  %v576_v9 = vld [vmem:[%s791_s1 + $0x18] sm:$0xff]   ;;  %v578_v11 = vld [vmem:[%s791_s1 + $0x10] sm:$0xff]  }
   0x5   :  { %v585_v12 = vld [vmem:[%s790_s0 + $0x4] ss:$8 sps:$4 sm:$0xff]  }
   0x6   :  { %213 = vmatprep.mubr.bf16.mxu0 %v585_v12 }
   0x7   :  { %523 = vmatpush3.bf16.msra.mxu0 %v570_v3 }
   0x8   :  { %524 = vmatprep.subr.bf16.mxu0 %v571_v4 }
   0xb   :  { %525 = vmatpush3.bf16.msra.mxu0 %v572_v5 }
   0xc   :  { %526 = vmatprep.subr.bf16.mxu0 %v573_v6 }
   0xf   :  { %527 = vmatpush3.bf16.msra.mxu0 %v574_v7 }
  0x10   :  { %528 = vmatprep.subr.bf16.mxu0 %v575_v8 }
  0x13   :  { %529 = vmatpush3.bf16.msra.mxu0 %v576_v9 }
  0x14   :  { %14 = vsyncpa [#allocation3], 0  ;;  %530 = vmatprep.subr.bf16.mxu0 %v577_v10  ;;  %v579_v13 = vld [vmem:[%s791_s1 + $0x48] sm:$0xff]   ;;  %v581_v15 = vld [vmem:[%s791_s1 + $0x40] sm:$0xff]   ;;  %vm256_vm0 = vcmask 1041408   ;;  %v640_v19 = vmov 0.0  }
  0x15   :  { %v580_v14 = vld [vmem:[%s791_s1 + $0x8] sm:$0xff]   ;;  %v582_v16 = vld [vmem:[%s791_s1] sm:$0xff]   ;;  %547 = vmatprep.subr.bf16.mxu1 %v640_v19  ;;  %vm641_vm1 = vmmov 0   ;;  %vm252_vm2 = vcmask 162816   ;;  %vm330_vm3 = vcmask 1044480   ;;  %vm326_vm4 = vcmask 80896  }
  0x16   :  { %v583_v17 = vld [vmem:[%s790_s0] ss:$8 sps:$4 sm:$0xff]   ;;  %551 = vmatprep.mubr.msk.bf16.mxu1 %vm641_vm1, %v640_v19  ;;  %v388_v62 = vld [vmem:[%s797_s7 + $0x10] sm:$0x33]  ;;  %v593_v1 = vld [vmem:[%s797_s7 + $0x4] ss:$8 sps:$4 sm:$0xff]  }
  0x17   :  { %531 = vmatpush3.bf16.msra.mxu0 %v578_v11  ;;  %v586_v18 = vld [vmem:[%s793_s3 + $0x8] ss:$0 sps:$4 sm:$0x33]   ;;  %v587_v21 = vld [vmem:[%s793_s3] sm:$0xff]   ;;  %v517_v63 = vcombine.high %v388_v62, %v388_v62  ;;  %v516_v0 = vcombine.low %v388_v62, %v388_v62  ;;  %v642_v2 = vmov 0   ;;  %s643_s15 = smov [#allocation2]  }
  0x18   :  { %532 = vmatprep.subr.bf16.mxu0 %v579_v13  ;;  %v258_v20 = vsel %vm256_vm0, %v586_v18, 0  ;;  %v488_v23 = vld [vmem:[%s792_s2] ss:$0 sm:$0xff]  ;;  %s477_s16 = sshll.u32 %s643_s15, 4  ;;  %s478_s16 = int_to_ptr.vmem [resolvable:$true] %s477_s16 }
  0x19   :  { %548 = vmatpush3.bf16.msra.mxu1 %v258_v20  ;;  %v588_v42 = vld [vmem:[%s795_s5] sm:$0x1f]   ;;  %v420_v3 = vsel %vm256_vm0, %v516_v0, 0  ;;  %s618_s17 = scalar_lea.vmem %s478_s16, 512  ;;  %p623_p1 = scmp.lt.s32.totalorder %s478_s16, %s478_s16 }
  0x1a   :  { %549 = vmatprep.subr.bf16.mxu1 %v640_v19  ;;  %v332_v43 = vsel %vm330_vm3, %v588_v42, 0  ;;  %v507_v44 = vld [vmem:[%s794_s4] ss:$0 sm:$0xff]  ;;  %p619_p0 = scmp.ne.s32.totalorder %s478_s16, %s618_s17  ;;  %p624_p2 = scmp.lt.s32.totalorder %s618_s17, %s618_s17 }
  0x1b   :  { %533 = vmatpush3.bf16.msra.mxu0 %v580_v14  ;;  %v591_v4 = vld [vmem:[%s797_s7] ss:$8 sps:$4 sm:$0xff]  }
  0x1c   :  { %534 = vmatprep.subr.bf16.mxu0 %v581_v15  ;;  %v511_v5 = vld [vmem:[%s796_s6] ss:$0 sm:$0xff]  ;;  %p625_p3 = por %p624_p2, %p623_p1 }
  0x1d   :  { %550 = vmatpush3.bf16.msra.mxu1 %v587_v21 }
  0x1e   :  { %555 = vmatprep.subr.bf16.mxu1 %v640_v19  ;;  %p626_p4 = pnand %p625_p3, %p619_p0 }
  0x1f   :  { %535 = vmatpush3.bf16.msra.mxu0 %v582_v16 }
  0x22   :  { %214 = vmatmul.mubr.bf16.vlgmr.msra.gmra.mxu0 %v583_v17 }
  0xe2   :  { %v536_v22 = vpop.f32.mrf.mxu0 }
  0xe4   :  { %v537_v24 = vpop.f32.mrf.mxu0 }
  0xe5   :  { %v538_v25 = vadd.f32 %v537_v24, %v536_v22 }
  0xe6   :  { %v539_v26 = vpop.f32.mrf.mxu0 }
  0xe7   :  { %v216_v27 = vadd.f32 %v538_v25, %v488_v23 }
  0xe8   :  { %v540_v28 = vpop.f32.mrf.mxu0 }
  0xe9   :  { %v222_v29 = vsub.f32 0.0, %v216_v27  ;;  %v541_v30 = vadd.f32 %v540_v28, %v539_v26  ;;  %v389_v26 = vld [vmem:[%s798_s8] sm:$0x3] }
  0xeb   :  { %v224_v31 = vmul.f32 1.442695, %v222_v29  ;;  %v219_v32 = vadd.f32 %v541_v30, %v488_v23  ;;  %v391_v23 = vlaneseq }
  0xed   :  { %594 = vpow2.f32 %v224_v31  ;;  %v223_v33 = vsub.f32 0.0, %v219_v32  ;;  %v392_v24 = vshrl.u32 %v391_v23, 7 }
  0xef   :  { %v226_v34 = vmul.f32 1.442695, %v223_v33  ;;  %v393_v25 = vsub.s32 0, %v392_v24  ;;  %v397_v27 = vsub.s32 1, %v392_v24 }
  0xf1   :  { %596 = vpow2.f32 %v226_v34  ;;  %v394_v28 = vrot.slane %v389_v26, %v393_v25  ;;  %v398_v29 = vrot.slane %v389_v26, %v397_v27 }
  0xfa   :  { %v595_v35 = vpop.eup %594 }
  0xfb   :  { %v228_v36 = vadd.f32 1.0, %v595_v35 }
  0xfd   :  { %598 = vrcp.f32 %v228_v36 }
  0xfe   :  { %v597_v37 = vpop.eup %596 }
  0xff   :  { %v229_v38 = vadd.f32 1.0, %v597_v37 }
 0x101   :  { %600 = vrcp.f32 %v229_v38 }
 0x10a   :  { %v599_v39 = vpop.eup %598 }
 0x10e   :  { %v601_v40 = vpop.eup %600 }
 0x10f   :  { %v232_v41 = vpack.c.bf16 %v601_v40, %v599_v39 }
 0x111   :  { %552 = vmatmul.mubr.msk.bf16.vlgmr.msra.gmra.mxu1 %vm252_vm2, %v232_v41 }
 0x112   :  { %557 = vmatprep.mubr.msk.bf16.mxu1 %vm641_vm1, %v640_v19  ;;  %556 = vmatpush3.bf16.msra.mxu1 %v332_v43 }
 0x113   :  { %518 = vmatprep.subr.msk.bf16.mxu1 %vm256_vm0, %v517_v63 }
 0x1d1   :  { %v294_v45 = vpop.f32.mrf.mxu1 }
 0x1d2   :  { %v295_v46 = vadd.f32 %v507_v44, %v294_v45 }
 0x1d3   :  { %v553_v47 = vpop.f32.mrf.mxu1 }
 0x1d4   :  { %v301_v48 = vsub.f32 0.0, %v295_v46 }
 0x1d5   :  { %v297_v49 = vpop.f32.mrf.mxu1 }
 0x1d6   :  { %v303_v50 = vmul.f32 1.442695, %v301_v48  ;;  %v298_v51 = vadd.f32 %v507_v44, %v297_v49 }
 0x1d7   :  { %v554_v52 = vpop.f32.mrf.mxu1 }
 0x1d8   :  { %602 = vpow2.f32 %v303_v50  ;;  %v302_v53 = vsub.f32 0.0, %v298_v51 }
 0x1da   :  { %v305_v54 = vmul.f32 1.442695, %v302_v53 }
 0x1dc   :  { %604 = vpow2.f32 %v305_v54 }
 0x1e5   :  { %v603_v55 = vpop.eup %602 }
 0x1e6   :  { %v307_v56 = vadd.f32 1.0, %v603_v55 }
 0x1e8   :  { %606 = vrcp.f32 %v307_v56 }
 0x1e9   :  { %v605_v57 = vpop.eup %604 }
 0x1ea   :  { %v308_v58 = vadd.f32 1.0, %v605_v57 }
 0x1ec   :  { %608 = vrcp.f32 %v308_v58 }
 0x1f5   :  { %v607_v59 = vpop.eup %606 }
 0x1f9   :  { %v609_v60 = vpop.eup %608 }
 0x1fa   :  { %v311_v61 = vpack.c.bf16 %v609_v60, %v607_v59 }
 0x1fc   :  { %558 = vmatmul.mubr.msk.bf16.vlgmr.msra.gmra.mxu1 %vm326_vm4, %v311_v61 }
 0x1fd   :  { %457 = vmatprep.mubr.bf16.mxu1 %v642_v2  ;;  %438 = vmatpush1.bf16.msra.mxu1 %v420_v3 }
 0x1fe   :  { %439 = vmatprep.subr.bf16.mxu1 %v593_v1 }
 0x201   :  { %440 = vmatpush1.bf16.msra.mxu1 %v591_v4 }
 0x2bc   :  { %v368_v6 = vpop.f32.mrf.mxu1 }
 0x2bd   :  { %v369_v7 = vadd.f32 %v511_v5, %v368_v6 }
 0x2be   :  { %v559_v8 = vpop.f32.mrf.mxu1 }
 0x2bf   :  { %v375_v9 = vsub.f32 0.0, %v369_v7 }
 0x2c0   :  { %v371_v10 = vpop.f32.mrf.mxu1 }
 0x2c1   :  { %v377_v11 = vmul.f32 1.442695, %v375_v9  ;;  %v372_v12 = vadd.f32 %v511_v5, %v371_v10 }
 0x2c2   :  { %v560_v13 = vpop.f32.mrf.mxu1 }
 0x2c3   :  { %610 = vpow2.f32 %v377_v11  ;;  %v376_v14 = vsub.f32 0.0, %v372_v12 }
 0x2c5   :  { %v379_v15 = vmul.f32 1.442695, %v376_v14 }
 0x2c7   :  { %612 = vpow2.f32 %v379_v15 }
 0x2d0   :  { %v611_v16 = vpop.eup %610 }
 0x2d1   :  { %v381_v17 = vadd.f32 1.0, %v611_v16 }
 0x2d3   :  { %614 = vrcp.f32 %v381_v17 }
 0x2d4   :  { %v613_v18 = vpop.eup %612 }
 0x2d5   :  { %v382_v19 = vadd.f32 1.0, %v613_v18 }
 0x2d7   :  { %616 = vrcp.f32 %v382_v19 }
 0x2e0   :  { %v615_v20 = vpop.eup %614 }
 0x2e4   :  { %v617_v21 = vpop.eup %616 }
 0x2e5   :  { %v385_v22 = vpack.c.bf16 %v617_v21, %v615_v20 }
 0x2e7   :  { %519 = vmatmul.mubr.msk.bf16.vlgmr.msra.gmra.mxu1 %vm252_vm2, %v385_v22 }
 0x3a7   :  { %v459_v30 = vpop.f32.mrf.mxu1 }
 0x3a8   :  { %v460_v31 = vadd.f32 %v459_v30, %v394_v28 }
 0x3a9   :  { %v461_v32 = vpop.f32.mrf.mxu1 }
 0x3aa   :  { %468 = vst [vmem:[#allocation2] sm:$0xff] %v460_v31  ;;  %v462_v33 = vadd.f32 %v461_v32, %v398_v29 }
 0x3ab   :  { %v463_v34 = vpop.f32.mrf.mxu1 }
 0x3ac   :  { %469 = vst [vmem:[#allocation2 + $0x8] sm:$0xff] %v462_v33  ;;  %v464_v35 = vadd.f32 %v463_v34, %v394_v28 }
 0x3ad   :  { %v465_v36 = vpop.f32.mrf.mxu1 }
 0x3ae   :  { %470 = vst [vmem:[#allocation2 + $0x10] sm:$0xff] %v464_v35  ;;  %v466_v37 = vadd.f32 %v465_v36, %v398_v29 }
 0x3b0   :  { %471 = vst [vmem:[#allocation2 + $0x18] sm:$0xff] %v466_v37 }
 0x3b1   :  { %629 = shalt.err (!%p626_p4)
}
 0x3b2   :  { %s644_s8 = smov 256   ;;  %s645_s18 = smov 16  }
 0x3b3   :  { %483 = dma.vmem_to_hbm [thread:$0]  %s478_s16, 512, %s799_s9, [#allocation3], %s644_s8, %s644_s8, %s645_s18  }
 0x3b4   :  { %638 = dma.done.wait [#allocation3], 512  }
 0x3b5   :  { %639 = vsyncadd [#allocation3], 4294966784 }
 0x3b6   :  { %487 = vsyncpa [#allocation3], 1 }

</bundles_post_ra>
